<compile_context>
chip_gen: v7x
topology: tpu7x:2x2x1
jax: 0.10.0
libtpu: 0.0.40
codegen_flags: <defaults>
</compile_context>

<pallas_src>
import math

import numpy as np
import jax
import jax.numpy as jnp
from jax.experimental import pallas as pl
from jax.experimental.pallas import tpu as pltpu


def _round_up(x, m):
    return ((x + m - 1) // m) * m


def _box_embed_kernel(x_ref, w_ref, b_ref, o_ref):
    # x_ref: (TM, K)  w_ref: (K, HP)  b_ref: (1, HP)  o_ref: (TM, HP)
    y = jnp.dot(x_ref[...], w_ref[...], preferred_element_type=jnp.float32)
    y = y + b_ref[...]
    o_ref[...] = jnp.maximum(y, 0.0).astype(o_ref.dtype)


def _device_is_v5():
    try:
        return "v5" in jax.devices()[0].device_kind.lower()
    except Exception:  # pragma: no cover - defensive (unknown backend)
        return False


def _choose_packing(h):
    """Packing factor P = logical rows per lane-dense packed row."""
    if h <= 0 or 128 % h != 0:
        return 1                  # slow fallback: lane-masked H-wide stores
    p_out = 128 // h              # makes the OUTPUT lane dense (H*P = 128)
    if _device_is_v5():
        # v5e: keep flops/row low so the kernel stays clearly HBM-bound.
        return p_out
    # v6e / v7x: also make the INPUT lane dense (4P >= 128).
    return max(p_out, 32)


def _pick_row_tile(m, k, hp, vmem_buffer_budget=12 << 20):
    """Packed-row tile size.

    Big enough that each grid step moves multiple MiB (amortizes per-step
    pipeline overhead), small enough that double-buffered in+out tiles fit the
    VMEM budget, and capped so the grid has >= 2 steps (v7x megacore).
    """
    k_pad = _round_up(max(k, 1), 128)      # lane padding of the input tile
    hp_pad = _round_up(max(hp, 1), 128)    # lane padding of the output tile
    bytes_per_row = 2 * 4 * (k_pad + hp_pad)   # double-buffered f32 in+out
    tm = max(8, (vmem_buffer_budget // bytes_per_row) // 8 * 8)
    if m >= 16:
        # At least two grid iterations so ("parallel",) shards across both
        # v7x TensorCores (harmless on single-TC v5e/v6e).
        tm = min(tm, max(8, _round_up(-(-m // 2), 8)))
    else:
        tm = m                              # single full-extent block (legal)
    return tm


def make_pie_feature_extractor(weight, bias, *, out_dtype=jnp.float32):
    """Build the PIEFeatureExtractor forward pass.

    weight: (4, H) float  (transpose of torch nn.Linear(4, H).weight)
    bias:   (H,)   float
    Returns apply(x) with x of shape (..., 4) -> (..., H), relu(x @ W + b).
    Packed weight/bias are precomputed here once, not per call.
    """
    k_in, h = weight.shape
    assert k_in == 4, "box input must have 4 features"

    p = _choose_packing(h)
    kp = 4 * p
    hp = h * p

    w32 = weight.astype(jnp.float32)
    b32 = bias.astype(jnp.float32)
    if p > 1:
        # Block-diagonal weight kron(I_P, W): logical row j of a packed row
        # reads input cols [4j, 4j+4) and writes output cols [j*H, (j+1)*H).
        w_packed = jnp.kron(jnp.eye(p, dtype=jnp.float32), w32)
        b_packed = jnp.tile(b32, (p,)).reshape(1, hp)
    else:
        w_packed = w32
        b_packed = b32.reshape(1, h)

    out_itemsize = np.dtype(out_dtype).itemsize

    def apply(x):
        orig_shape = x.shape
        assert orig_shape[-1] == 4, "box input must have 4 features in last dim"
        n = math.prod(orig_shape[:-1])
        x2 = x.reshape(n, 4).astype(jnp.float32)

        m = n // p               # full packed rows handled by the kernel
        r = n - m * p            # leftover logical rows (< P)

        pieces = []
        if m > 0:
            xp = x2[: m * p].reshape(m, kp)   # metadata-only when r == 0
            tm = _pick_row_tile(m, kp, hp)
            grid = (pl.cdiv(m, tm),)
            out = pl.pallas_call(
                _box_embed_kernel,
                out_shape=jax.ShapeDtypeStruct((m, hp), out_dtype),
                grid=grid,
                in_specs=[
                    pl.BlockSpec((tm, kp), lambda i: (i, 0)),
                    pl.BlockSpec((kp, hp), lambda i: (0, 0)),   # resident weight
                    pl.BlockSpec((1, hp), lambda i: (0, 0)),    # resident bias
                ],
                out_specs=pl.BlockSpec((tm, hp), lambda i: (i, 0)),
                compiler_params=pltpu.CompilerParams(
                    dimension_semantics=("parallel",),   # megacore sharding (v7x)
                    vmem_limit_bytes=32 * 1024 * 1024,   # covers 2x(in+out)+weight
                ),
                cost_estimate=pl.CostEstimate(
                    flops=2 * m * kp * hp,
                    transcendentals=0,
                    bytes_accessed=4 * (m * kp + kp * hp + hp)
                    + m * hp * out_itemsize,
                ),
            )(xp, w_packed, b_packed)
            # Packed row i holds logical rows [i*P, (i+1)*P) in H-wide column
            # blocks; row-major reshape unpacks them (bitcast, no HBM pass).
            pieces.append(out.reshape(m * p, h))
        if r > 0:
            # Tiny epilogue for the < P tail rows: plain JAX.  This replaces
            # the old full-array jnp.pad + output[:n] slice (two extra HBM
            # passes) with work on at most P-1 rows.
            tail = jnp.maximum(x2[m * p:] @ w32 + b32, 0.0).astype(out_dtype)
            pieces.append(tail)

        out_flat = pieces[0] if len(pieces) == 1 else jnp.concatenate(pieces, axis=0)
        return out_flat.reshape(*orig_shape[:-1], h)

    return apply


if __name__ == "__main__":
    key = jax.random.PRNGKey(0)
    k_x, k_w, k_b, k_x2 = jax.random.split(key, 4)

    hidden_size = 32
    # nn.Linear(4, H): weight (H, 4), bias (H,).  We pass W^T = (4, H).
    bound = 1.0 / math.sqrt(4.0)
    w = jax.random.uniform(k_w, (4, hidden_size), jnp.float32, -bound, bound)
    b = jax.random.uniform(k_b, (hidden_size,), jnp.float32, -bound, bound)

    box_embed = make_pie_feature_extractor(w, b)   # packed weights built once

    # Main case: batch=2, seq=128 boxes of 4 coords (P-aligned -> pure kernel path).
    x = jax.random.normal(k_x, (2, 128, 4), dtype=jnp.float32)
    out = box_embed(x)
    jax.block_until_ready(out)
    ref = jnp.maximum(jnp.einsum("bsf,fh->bsh", x, w) + b, 0.0)
    assert out.shape == (2, 128, hidden_size)
    assert jnp.allclose(out, ref, atol=1e-5, rtol=1e-5), "mismatch vs reference (main)"

    # Small / non-P-aligned case: batch=2, seq=8 (exercises the tail epilogue).
    x_small = jax.random.normal(k_x2, (2, 8, 4), dtype=jnp.float32)
    out_small = box_embed(x_small)
    jax.block_until_ready(out_small)
    ref_small = jnp.maximum(jnp.einsum("bsf,fh->bsh", x_small, w) + b, 0.0)
    assert out_small.shape == (2, 8, hidden_size)
    assert jnp.allclose(out_small, ref_small, atol=1e-5, rtol=1e-5), "mismatch vs reference (small)"

    print("KERNEL_OK")
</pallas_src>

<mosaic_0001>
module attributes {stable_mosaic.version = 11 : i64} {
  func.func @_box_embed_kernel(%arg0: i32, %arg1: memref<8x128xf32, #tpu.memory_space<vmem>>, %arg2: memref<128x1024xf32, #tpu.memory_space<vmem>>, %arg3: memref<1x1024xf32, #tpu.memory_space<vmem>>, %arg4: memref<8x1024xf32, #tpu.memory_space<vmem>>) attributes {dimension_semantics = [#tpu.dimension_semantics<parallel>], iteration_bounds = array<i64: 1>, scalar_prefetch = 0 : i64, scratch_operands = 0 : i64, tpu.core_type = #tpu.core_type<tc>, window_params = [{transform_indices = @transform_0, window_bounds = array<i64: 8, 128>}, {pipeline_mode = #tpu.pipeline_mode<synchronous>, transform_indices = @transform_1, window_bounds = array<i64: 128, 1024>}, {pipeline_mode = #tpu.pipeline_mode<synchronous>, transform_indices = @transform_2, window_bounds = array<i64: 1, 1024>}, {transform_indices = @transform_3, window_bounds = array<i64: 8, 1024>}]} {
    %c0 = arith.constant 0 : index
    %c0_0 = arith.constant 0 : index
    %0 = vector.load %arg1[%c0, %c0_0] : memref<8x128xf32, #tpu.memory_space<vmem>>, vector<8x128xf32>
    %c0_1 = arith.constant 0 : index
    %c0_2 = arith.constant 0 : index
    %1 = vector.load %arg2[%c0_1, %c0_2] : memref<128x1024xf32, #tpu.memory_space<vmem>>, vector<128x1024xf32>
    %cst = arith.constant dense<0.000000e+00> : vector<8x1024xf32>
    %2 = tpu.matmul %0, %1, %cst {dimension_numbers = #tpu.dot_dimension_numbers<[1], [0], [0], [1], [0, 0, 1, 1], [], []>} : vector<8x128xf32>, vector<128x1024xf32>, vector<8x1024xf32> -> vector<8x1024xf32>
    %c0_3 = arith.constant 0 : index
    %c0_4 = arith.constant 0 : index
    %3 = vector.load %arg3[%c0_3, %c0_4] : memref<1x1024xf32, #tpu.memory_space<vmem>>, vector<1x1024xf32>
    %4 = vector.broadcast %3 : vector<1x1024xf32> to vector<8x1024xf32>
    %5 = arith.addf %2, %4 : vector<8x1024xf32>
    %cst_5 = arith.constant 0.000000e+00 : f32
    %6 = vector.broadcast %cst_5 : f32 to vector<8x1024xf32>
    %7 = arith.maximumf %5, %6 : vector<8x1024xf32>
    %c0_6 = arith.constant 0 : index
    %c0_7 = arith.constant 0 : index
    %8 = vector.load %arg4[%c0_6, %c0_7] : memref<8x1024xf32, #tpu.memory_space<vmem>>, vector<8x1024xf32>
    tpu.vector_store %arg4[%c0_6, %c0_7], %7 {strides = array<i32>} : memref<8x1024xf32, #tpu.memory_space<vmem>>, vector<8x1024xf32>,
    return
  }
  func.func @transform_0(%arg0: i32) -> (i32, i32) {
    %c0_i32 = arith.constant 0 : i32
    %c0_i32_0 = arith.constant 0 : i32
    return %arg0, %c0_i32 : i32, i32
  }
  func.func @transform_1(%arg0: i32) -> (i32, i32) {
    %c0_i32 = arith.constant 0 : i32
    %c0_i32_0 = arith.constant 0 : i32
    %c0_i32_1 = arith.constant 0 : i32
    return %c0_i32, %c0_i32_0 : i32, i32
  }
  func.func @transform_2(%arg0: i32) -> (i32, i32) {
    %c0_i32 = arith.constant 0 : i32
    %c0_i32_0 = arith.constant 0 : i32
    %c0_i32_1 = arith.constant 0 : i32
    return %c0_i32, %c0_i32_0 : i32, i32
  }
  func.func @transform_3(%arg0: i32) -> (i32, i32) {
    %c0_i32 = arith.constant 0 : i32
    %c0_i32_0 = arith.constant 0 : i32
    return %arg0, %c0_i32 : i32, i32
  }
}

</mosaic_0001>

<bundles_post_ra>
// kernel: tpu_custom_call.1
= control target key start
LH: loop header
LB: loop body
LE: loop exit
PB: predicated region body
PF: predicated region fallthrough
CT: control target
= control target key end

     0   :  { %8 = vsyncpa [#allocation3], 0  ;;  %s853_s0 = inlined_call_operand.hbm [shape: f32[8,128], index: 0, kind: input, shape index: {}]   ;;  %s854_s1 = inlined_call_operand.hbm [shape: f32[128,1024], index: 1, kind: input, shape index: {}]   ;;  %s855_s2 = inlined_call_operand.hbm [shape: f32[1,1024], index: 2, kind: input, shape index: {}]   ;;  %s856_s3 = inlined_call_operand.hbm [shape: f32[8,1024], index: 3, kind: output, shape index: {}]  }
   0x1   :  { %9 = vsyncpa [#allocation6], 0 }
   0x2   :  { %10 = vsyncpa [#allocation4], 0  ;;  %s768_s12 = smov [#allocation5]   ;;  %s674_s16 = scalar_lea.hbm %s854_s1, 16384 }
   0x3   :  { %s26_s13 = sshll.u32 %s768_s12, 4  ;;  %p675_p0 = scmp.ne.s32.totalorder %s854_s1, %s674_s16  ;;  %s27_s13 = int_to_ptr.vmem [resolvable:$true] %s26_s13 }
   0x4   :  { %p678_p1 = scmp.lt.u32.totalorder %s674_s16, %s854_s1 }
   0x6   :  { %p680_p2 = pnand %p678_p1, %p675_p0 }
   0x8   :  { %683 = shalt.err (!%p680_p2)
}
   0x9   :  { %s684_s21 = scalar_lea.vmem %s27_s13, 16384  ;;  %p689_p4 = scmp.lt.s32.totalorder %s27_s13, %s27_s13 }
   0xa   :  { %p685_p3 = scmp.ne.s32.totalorder %s27_s13, %s684_s21  ;;  %p690_p5 = scmp.lt.s32.totalorder %s684_s21, %s684_s21 }
   0xc   :  { %p691_p6 = por %p690_p5, %p689_p4 }
   0xe   :  { %p692_p7 = pnand %p691_p6, %p685_p3 }
  0x10   :  { %695 = shalt.err (!%p692_p7)
}
  0x11   :  { %s769_s22 = smov 1024   ;;  %s770_s23 = smov 64  }
  0x12   :  { %32 = dma.hbm_to_vmem [thread:$0]  %s854_s1, 16384, %s27_s13, [#allocation6], %s769_s22, %s769_s22, %s770_s23  }
  0x13   :  { %s771_s26 = smov [#allocation2]   ;;  %s772_s28 = smov [#allocation7]  }
  0x14   :  { %s17_s27 = sshll.u32 %s771_s26, 4  ;;  %s39_s29 = sshll.u32 %s772_s28, 4  ;;  %s18_s27 = int_to_ptr.vmem [resolvable:$true] %s17_s27  ;;  %s40_s29 = int_to_ptr.vmem [resolvable:$true] %s39_s29 }
  0x15   :  { %s696_s5 = scalar_lea.hbm %s853_s0, 128 }
  0x16   :  { %p697_p8 = scmp.ne.s32.totalorder %s853_s0, %s696_s5  ;;  %p700_p9 = scmp.lt.u32.totalorder %s696_s5, %s853_s0 }
  0x18   :  { %p702_p10 = pnand %p700_p9, %p697_p8 }
  0x1a   :  { %705 = shalt.err (!%p702_p10)
}
  0x1b   :  { %s706_s1 = scalar_lea.vmem %s18_s27, 128  ;;  %p711_p12 = scmp.lt.s32.totalorder %s18_s27, %s18_s27 }
  0x1c   :  { %p707_p11 = scmp.ne.s32.totalorder %s18_s27, %s706_s1  ;;  %p712_p13 = scmp.lt.s32.totalorder %s706_s1, %s706_s1 }
  0x1e   :  { %p713_p0 = por %p712_p13, %p711_p12 }
  0x20   :  { %p714_p1 = pnand %p713_p0, %p707_p11 }
  0x22   :  { %717 = shalt.err (!%p714_p1)
}
  0x23   :  { %20 = dma.hbm_to_vmem [thread:$0]  %s853_s0, 128, %s18_s27, [#allocation3]  }
  0x24   :  { %s718_s14 = scalar_lea.hbm %s855_s2, 128 }
  0x25   :  { %p719_p2 = scmp.ne.s32.totalorder %s855_s2, %s718_s14  ;;  %p722_p3 = scmp.lt.u32.totalorder %s718_s14, %s855_s2 }
  0x27   :  { %p724_p4 = pnand %p722_p3, %p719_p2 }
  0x29   :  { %727 = shalt.err (!%p724_p4)
}
  0x2a   :  { %s728_s19 = scalar_lea.vmem %s40_s29, 128  ;;  %p733_p6 = scmp.lt.s32.totalorder %s40_s29, %s40_s29 }
  0x2b   :  { %p729_p5 = scmp.ne.s32.totalorder %s40_s29, %s728_s19  ;;  %p734_p7 = scmp.lt.s32.totalorder %s728_s19, %s728_s19 }
  0x2d   :  { %p735_p8 = por %p734_p7, %p733_p6 }
  0x2f   :  { %p736_p9 = pnand %p735_p8, %p729_p5 }
  0x31   :  { %739 = shalt.err (!%p736_p9)
}
  0x32   :  { %42 = dma.hbm_to_vmem [thread:$0]  %s855_s2, 128, %s40_s29, [#allocation6]  }
  0x33   :  { %762 = dma.done.wait [#allocation3], 128  }
  0x34   :  { %763 = vsyncadd [#allocation3], 4294967168 }
  0x35   :  { %764 = dma.done.wait [#allocation6], 16512  }
  0x36   :  { %765 = vsyncadd [#allocation6], 4294950784  ;;  %v773_v0 = vmov 0.0   ;;  %v54_v1 = vld [vmem:[#allocation5 + $0x8] sm:$0xff]  ;;  %v56_v3 = vld [vmem:[#allocation5 + $0x18] sm:$0xff]  ;;  %s774_s2 = smov [#allocation8]  }
  0x37   :  { %287 = vmatprep.mubr.f32.mxu0 %v773_v0  ;;  %358 = vmatprep.mubr.f32.mxu1 %v773_v0  ;;  %v62_v2 = vld [vmem:[#allocation5 + $0x48] sm:$0xff]  ;;  %v64_v5 = vld [vmem:[#allocation5 + $0x58] sm:$0xff]  ;;  %v53_v6 = vld [vmem:[#allocation5] sm:$0xff]  ;;  %s529_s21 = sshll.u32 %s774_s2, 4  ;;  %s530_s21 = int_to_ptr.vmem [resolvable:$true] %s529_s21 }
  0x38   :  { %v539_v4 = vpack.c.bf16 %v62_v2, %v54_v1  ;;  %v61_v7 = vld [vmem:[#allocation5 + $0x40] sm:$0xff]  ;;  %v571_v8 = vpack.c.bf16 %v64_v5, %v56_v3  ;;  %v55_v10 = vld [vmem:[#allocation5 + $0x10] sm:$0xff]  ;;  %v70_v12 = vld [vmem:[#allocation5 + $0x88] sm:$0xff]  ;;  %s740_s22 = scalar_lea.vmem %s530_s21, 1024  ;;  %p745_p11 = scmp.lt.s32.totalorder %s530_s21, %s530_s21 }
  0x39   :  { %v541_v9 = vpack.c.bf16 %v61_v7, %v53_v6  ;;  %v63_v11 = vld [vmem:[#allocation5 + $0x50] sm:$0xff]  ;;  %v78_v14 = vld [vmem:[#allocation5 + $0xc8] sm:$0xff]  ;;  %v72_v15 = vld [vmem:[#allocation5 + $0x98] sm:$0xff]  ;;  %p741_p10 = scmp.ne.s32.totalorder %s530_s21, %s740_s22  ;;  %p746_p12 = scmp.lt.s32.totalorder %s740_s22, %s740_s22 }
  0x3a   :  { %540 = vmatprep.subr.bf16.mxu0 %v539_v4  ;;  %v573_v13 = vpack.c.bf16 %v63_v11, %v55_v10  ;;  %v80_v16 = vld [vmem:[#allocation5 + $0xd8] sm:$0xff]  ;;  %572 = vmatprep.subr.bf16.mxu1 %v571_v8  ;;  %v543_v17 = vpack.c.bf16 %v78_v14, %v70_v12  ;;  %v69_v19 = vld [vmem:[#allocation5 + $0x80] sm:$0xff]  ;;  %v71_v21 = vld [vmem:[#allocation5 + $0x90] sm:$0xff] }
  0x3b   :  { %542 = vmatpush1.bf16.msra.mxu0 %v541_v9  ;;  %v575_v18 = vpack.c.bf16 %v80_v16, %v72_v15  ;;  %v77_v20 = vld [vmem:[#allocation5 + $0xc0] sm:$0xff]  ;;  %v79_v23 = vld [vmem:[#allocation5 + $0xd0] sm:$0xff]  ;;  %v86_v24 = vld [vmem:[#allocation5 + $0x108] sm:$0xff]  ;;  %p747_p13 = por %p746_p12, %p745_p11 }
  0x3c   :  { %574 = vmatpush1.bf16.msra.mxu1 %v573_v13  ;;  %v545_v22 = vpack.c.bf16 %v77_v20, %v69_v19  ;;  %v94_v25 = vld [vmem:[#allocation5 + $0x148] sm:$0xff]  ;;  %544 = vmatprep.subr.bf16.mxu0 %v543_v17  ;;  %v577_v26 = vpack.c.bf16 %v79_v23, %v71_v21  ;;  %v88_v28 = vld [vmem:[#allocation5 + $0x118] sm:$0xff]  ;;  %v85_v30 = vld [vmem:[#allocation5 + $0x100] sm:$0xff] }
  0x3d   :  { %576 = vmatprep.subr.bf16.mxu1 %v575_v18  ;;  %v547_v27 = vpack.c.bf16 %v94_v25, %v86_v24  ;;  %v96_v29 = vld [vmem:[#allocation5 + $0x158] sm:$0xff]  ;;  %v93_v32 = vld [vmem:[#allocation5 + $0x140] sm:$0xff]  ;;  %v87_v33 = vld [vmem:[#allocation5 + $0x110] sm:$0xff]  ;;  %p748_p0 = pnand %p747_p13, %p741_p10 }
  0x3e   :  { %v579_v31 = vpack.c.bf16 %v96_v29, %v88_v28  ;;  %v95_v34 = vld [vmem:[#allocation5 + $0x150] sm:$0xff]  ;;  %v549_v35 = vpack.c.bf16 %v93_v32, %v85_v30  ;;  %v102_v36 = vld [vmem:[#allocation5 + $0x188] sm:$0xff]  ;;  %v104_v38 = vld [vmem:[#allocation5 + $0x198] sm:$0xff] }
  0x3f   :  { %546 = vmatpush1.bf16.msra.mxu0 %v545_v22  ;;  %v110_v37 = vld [vmem:[#allocation5 + $0x1c8] sm:$0xff]  ;;  %v581_v39 = vpack.c.bf16 %v95_v34, %v87_v33  ;;  %v112_v41 = vld [vmem:[#allocation5 + $0x1d8] sm:$0xff]  ;;  %v101_v42 = vld [vmem:[#allocation5 + $0x180] sm:$0xff] }
  0x40   :  { %578 = vmatpush1.bf16.msra.mxu1 %v577_v26  ;;  %548 = vmatprep.subr.bf16.mxu0 %v547_v27  ;;  %v551_v40 = vpack.c.bf16 %v110_v37, %v102_v36  ;;  %v109_v43 = vld [vmem:[#allocation5 + $0x1c0] sm:$0xff]  ;;  %v583_v44 = vpack.c.bf16 %v112_v41, %v104_v38  ;;  %v103_v45 = vld [vmem:[#allocation5 + $0x190] sm:$0xff]  ;;  %v118_v47 = vld [vmem:[#allocation5 + $0x208] sm:$0xff] }
  0x41   :  { %580 = vmatprep.subr.bf16.mxu1 %v579_v31  ;;  %v111_v46 = vld [vmem:[#allocation5 + $0x1d0] sm:$0xff]  ;;  %v126_v48 = vld [vmem:[#allocation5 + $0x248] sm:$0xff]  ;;  %v120_v49 = vld [vmem:[#allocation5 + $0x218] sm:$0xff]  ;;  %v553_v51 = vpack.c.bf16 %v109_v43, %v101_v42 }
  0x42   :  { %v128_v50 = vld [vmem:[#allocation5 + $0x258] sm:$0xff]  ;;  %v585_v52 = vpack.c.bf16 %v111_v46, %v103_v45  ;;  %v555_v53 = vpack.c.bf16 %v126_v48, %v118_v47  ;;  %v117_v54 = vld [vmem:[#allocation5 + $0x200] sm:$0xff]  ;;  %v119_v56 = vld [vmem:[#allocation5 + $0x210] sm:$0xff] }
  0x43   :  { %550 = vmatpush1.bf16.msra.mxu0 %v549_v35  ;;  %v125_v55 = vld [vmem:[#allocation5 + $0x240] sm:$0xff]  ;;  %v587_v57 = vpack.c.bf16 %v128_v50, %v120_v49  ;;  %v127_v58 = vld [vmem:[#allocation5 + $0x250] sm:$0xff]  ;;  %v134_v59 = vld [vmem:[#allocation5 + $0x288] sm:$0xff] }
  0x44   :  { %582 = vmatpush1.bf16.msra.mxu1 %v581_v39  ;;  %552 = vmatprep.subr.bf16.mxu0 %v551_v40  ;;  %v142_v60 = vld [vmem:[#allocation5 + $0x2c8] sm:$0xff]  ;;  %v136_v61 = vld [vmem:[#allocation5 + $0x298] sm:$0xff]  ;;  %v557_v63 = vpack.c.bf16 %v125_v55, %v117_v54  ;;  %v589_v1 = vpack.c.bf16 %v127_v58, %v119_v56  ;;  %v133_v3 = vld [vmem:[#allocation5 + $0x280] sm:$0xff] }
  0x45   :  { %584 = vmatprep.subr.bf16.mxu1 %v583_v44  ;;  %v144_v62 = vld [vmem:[#allocation5 + $0x2d8] sm:$0xff]  ;;  %v559_v2 = vpack.c.bf16 %v142_v60, %v134_v59  ;;  %v141_v4 = vld [vmem:[#allocation5 + $0x2c0] sm:$0xff]  ;;  %v135_v5 = vld [vmem:[#allocation5 + $0x290] sm:$0xff] }
  0x46   :  { %v591_v6 = vpack.c.bf16 %v144_v62, %v136_v61  ;;  %v143_v7 = vld [vmem:[#allocation5 + $0x2d0] sm:$0xff]  ;;  %v150_v8 = vld [vmem:[#allocation5 + $0x308] sm:$0xff]  ;;  %v152_v10 = vld [vmem:[#allocation5 + $0x318] sm:$0xff]  ;;  %v561_v12 = vpack.c.bf16 %v141_v4, %v133_v3 }
  0x47   :  { %554 = vmatpush1.bf16.msra.mxu0 %v553_v51  ;;  %v158_v9 = vld [vmem:[#allocation5 + $0x348] sm:$0xff]  ;;  %v160_v11 = vld [vmem:[#allocation5 + $0x358] sm:$0xff]  ;;  %v593_v13 = vpack.c.bf16 %v143_v7, %v135_v5  ;;  %v149_v15 = vld [vmem:[#allocation5 + $0x300] sm:$0xff] }
  0x48   :  { %586 = vmatpush1.bf16.msra.mxu1 %v585_v52  ;;  %556 = vmatprep.subr.bf16.mxu0 %v555_v53  ;;  %v563_v14 = vpack.c.bf16 %v158_v9, %v150_v8  ;;  %v157_v16 = vld [vmem:[#allocation5 + $0x340] sm:$0xff]  ;;  %v151_v17 = vld [vmem:[#allocation5 + $0x310] sm:$0xff]  ;;  %v595_v18 = vpack.c.bf16 %v160_v11, %v152_v10  ;;  %v166_v20 = vld [vmem:[#allocation5 + $0x388] sm:$0xff] }
  0x49   :  { %588 = vmatprep.subr.bf16.mxu1 %v587_v57  ;;  %v159_v19 = vld [vmem:[#allocation5 + $0x350] sm:$0xff]  ;;  %v174_v21 = vld [vmem:[#allocation5 + $0x3c8] sm:$0xff]  ;;  %v168_v22 = vld [vmem:[#allocation5 + $0x398] sm:$0xff]  ;;  %v565_v24 = vpack.c.bf16 %v157_v16, %v149_v15 }
  0x4a   :  { %v176_v23 = vld [vmem:[#allocation5 + $0x3d8] sm:$0xff]  ;;  %v597_v25 = vpack.c.bf16 %v159_v19, %v151_v17  ;;  %v567_v26 = vpack.c.bf16 %v174_v21, %v166_v20  ;;  %v165_v27 = vld [vmem:[#allocation5 + $0x380] sm:$0xff]  ;;  %v167_v29 = vld [vmem:[#allocation5 + $0x390] sm:$0xff] }
  0x4b   :  { %558 = vmatpush1.bf16.msra.mxu0 %v557_v63  ;;  %v173_v28 = vld [vmem:[#allocation5 + $0x3c0] sm:$0xff]  ;;  %v599_v30 = vpack.c.bf16 %v176_v23, %v168_v22  ;;  %v175_v31 = vld [vmem:[#allocation5 + $0x3d0] sm:$0xff]  ;;  %v58_v32 = vld [vmem:[#allocation5 + $0x28] sm:$0xff] }
  0x4c   :  { %590 = vmatpush1.bf16.msra.mxu1 %v589_v1  ;;  %560 = vmatprep.subr.bf16.mxu0 %v559_v2  ;;  %v66_v33 = vld [vmem:[#allocation5 + $0x68] sm:$0xff]  ;;  %v60_v34 = vld [vmem:[#allocation5 + $0x38] sm:$0xff]  ;;  %v569_v36 = vpack.c.bf16 %v173_v28, %v165_v27  ;;  %v601_v37 = vpack.c.bf16 %v175_v31, %v167_v29  ;;  %v57_v39 = vld [vmem:[#allocation5 + $0x20] sm:$0xff] }
  0x4d   :  { %592 = vmatprep.subr.bf16.mxu1 %v591_v6  ;;  %v68_v35 = vld [vmem:[#allocation5 + $0x78] sm:$0xff]  ;;  %v603_v38 = vpack.c.bf16 %v66_v33, %v58_v32  ;;  %v65_v40 = vld [vmem:[#allocation5 + $0x60] sm:$0xff]  ;;  %v59_v41 = vld [vmem:[#allocation5 + $0x30] sm:$0xff] }
  0x4e   :  { %v635_v42 = vpack.c.bf16 %v68_v35, %v60_v34  ;;  %v67_v43 = vld [vmem:[#allocation5 + $0x70] sm:$0xff]  ;;  %v74_v44 = vld [vmem:[#allocation5 + $0xa8] sm:$0xff]  ;;  %v76_v46 = vld [vmem:[#allocation5 + $0xb8] sm:$0xff]  ;;  %v605_v49 = vpack.c.bf16 %v65_v40, %v57_v39 }
  0x4f   :  { %562 = vmatpush1.bf16.msra.mxu0 %v561_v12  ;;  %v82_v45 = vld [vmem:[#allocation5 + $0xe8] sm:$0xff]  ;;  %v84_v47 = vld [vmem:[#allocation5 + $0xf8] sm:$0xff]  ;;  %v637_v50 = vpack.c.bf16 %v67_v43, %v59_v41  ;;  %v73_v52 = vld [vmem:[#allocation5 + $0xa0] sm:$0xff] }
  0x50   :  { %594 = vmatpush1.bf16.msra.mxu1 %v593_v13  ;;  %564 = vmatprep.subr.bf16.mxu0 %v563_v14  ;;  %v833_v48 = vld [vmem:[#allocation2] sm:$0xff]  ;;  %v607_v51 = vpack.c.bf16 %v82_v45, %v74_v44  ;;  %v81_v53 = vld [vmem:[#allocation5 + $0xe0] sm:$0xff]  ;;  %v75_v54 = vld [vmem:[#allocation5 + $0xb0] sm:$0xff]  ;;  %v639_v55 = vpack.c.bf16 %v84_v47, %v76_v46 }
  0x51   :  { %596 = vmatprep.subr.bf16.mxu1 %v595_v18  ;;  %v83_v56 = vld [vmem:[#allocation5 + $0xf0] sm:$0xff]  ;;  %v90_v57 = vld [vmem:[#allocation5 + $0x128] sm:$0xff]  ;;  %v92_v59 = vld [vmem:[#allocation5 + $0x138] sm:$0xff]  ;;  %v609_v61 = vpack.c.bf16 %v81_v53, %v73_v52 }
  0x52   :  { %v98_v58 = vld [vmem:[#allocation5 + $0x168] sm:$0xff]  ;;  %v100_v60 = vld [vmem:[#allocation5 + $0x178] sm:$0xff]  ;;  %v641_v62 = vpack.c.bf16 %v83_v56, %v75_v54  ;;  %v89_v1 = vld [vmem:[#allocation5 + $0x120] sm:$0xff] }
  0x53   :  { %566 = vmatpush1.bf16.msra.mxu0 %v565_v24  ;;  %v611_v63 = vpack.c.bf16 %v98_v58, %v90_v57  ;;  %v97_v2 = vld [vmem:[#allocation5 + $0x160] sm:$0xff]  ;;  %v91_v3 = vld [vmem:[#allocation5 + $0x130] sm:$0xff]  ;;  %v643_v4 = vpack.c.bf16 %v100_v60, %v92_v59  ;;  %v106_v6 = vld [vmem:[#allocation5 + $0x1a8] sm:$0xff] }
  0x54   :  { %598 = vmatpush1.bf16.msra.mxu1 %v597_v25  ;;  %568 = vmatprep.subr.bf16.mxu0 %v567_v26  ;;  %v99_v5 = vld [vmem:[#allocation5 + $0x170] sm:$0xff]  ;;  %v114_v7 = vld [vmem:[#allocation5 + $0x1e8] sm:$0xff]  ;;  %v108_v8 = vld [vmem:[#allocation5 + $0x1b8] sm:$0xff]  ;;  %v613_v10 = vpack.c.bf16 %v97_v2, %v89_v1 }
  0x55   :  { %600 = vmatprep.subr.bf16.mxu1 %v599_v30  ;;  %v116_v9 = vld [vmem:[#allocation5 + $0x1f8] sm:$0xff]  ;;  %v645_v11 = vpack.c.bf16 %v99_v5, %v91_v3  ;;  %v615_v12 = vpack.c.bf16 %v114_v7, %v106_v6  ;;  %v105_v13 = vld [vmem:[#allocation5 + $0x1a0] sm:$0xff]  ;;  %v107_v15 = vld [vmem:[#allocation5 + $0x1b0] sm:$0xff]  ;;  %v183_v5 = vlaneseq }
  0x56   :  { %v113_v14 = vld [vmem:[#allocation5 + $0x1e0] sm:$0xff]  ;;  %v647_v16 = vpack.c.bf16 %v116_v9, %v108_v8  ;;  %v115_v17 = vld [vmem:[#allocation5 + $0x1f0] sm:$0xff]  ;;  %v122_v18 = vld [vmem:[#allocation5 + $0x228] sm:$0xff] }
  0x57   :  { %570 = vmatpush1.bf16.msra.mxu0 %v569_v36  ;;  %v130_v19 = vld [vmem:[#allocation5 + $0x268] sm:$0xff]  ;;  %v124_v20 = vld [vmem:[#allocation5 + $0x238] sm:$0xff]  ;;  %v617_v22 = vpack.c.bf16 %v113_v14, %v105_v13  ;;  %v121_v24 = vld [vmem:[#allocation5 + $0x220] sm:$0xff]  ;;  %v184_v6 = vshrl.u32 %v183_v5, 7 }
  0x58   :  { %602 = vmatpush1.bf16.msra.mxu1 %v601_v37  ;;  %604 = vmatprep.subr.bf16.mxu0 %v603_v38  ;;  %v132_v21 = vld [vmem:[#allocation5 + $0x278] sm:$0xff]  ;;  %v619_v23 = vpack.c.bf16 %v130_v19, %v122_v18  ;;  %v129_v25 = vld [vmem:[#allocation5 + $0x260] sm:$0xff]  ;;  %v123_v26 = vld [vmem:[#allocation5 + $0x230] sm:$0xff] }
  0x59   :  { %636 = vmatprep.subr.bf16.mxu1 %v635_v42  ;;  %v651_v27 = vpack.c.bf16 %v132_v21, %v124_v20  ;;  %v131_v28 = vld [vmem:[#allocation5 + $0x270] sm:$0xff]  ;;  %v138_v29 = vld [vmem:[#allocation5 + $0x2a8] sm:$0xff]  ;;  %v140_v31 = vld [vmem:[#allocation5 + $0x2b8] sm:$0xff]  ;;  %v621_v33 = vpack.c.bf16 %v129_v25, %v121_v24  ;;  %v185_v7 = vsub.s32 0, %v184_v6  ;;  %v193_v9 = vsub.s32 2, %v184_v6 }
  0x5a   :  { %288 = vmatmul.mubr.f32.vlgmr.msra.gmra.mrb[0].mxu0 %v833_v48  ;;  %v146_v30 = vld [vmem:[#allocation5 + $0x2e8] sm:$0xff]  ;;  %v148_v32 = vld [vmem:[#allocation5 + $0x2f8] sm:$0xff]  ;;  %v653_v34 = vpack.c.bf16 %v131_v28, %v123_v26  ;;  %v137_v36 = vld [vmem:[#allocation5 + $0x2a0] sm:$0xff]  ;;  %v201_v26 = vsub.s32 4, %v184_v6  ;;  %v205_v28 = vsub.s32 5, %v184_v6 }
  0x5b   :  { %359 = vmatmul.mubr.f32.vlgmr.msra.gmra.mrb[0].mxu1 %v833_v48  ;;  %606 = vmatpush1.bf16.msra.mxu0 %v605_v49  ;;  %v623_v35 = vpack.c.bf16 %v146_v30, %v138_v29  ;;  %v145_v37 = vld [vmem:[#allocation5 + $0x2e0] sm:$0xff]  ;;  %v139_v38 = vld [vmem:[#allocation5 + $0x2b0] sm:$0xff]  ;;  %v655_v39 = vpack.c.bf16 %v148_v32, %v140_v31  ;;  %v154_v41 = vld [vmem:[#allocation5 + $0x328] sm:$0xff]  ;;  %v213_v29 = vsub.s32 7, %v184_v6 }
  0x5c   :  { %638 = vmatpush1.bf16.msra.mxu1 %v637_v50  ;;  %608 = vmatprep.subr.bf16.mxu0 %v607_v51  ;;  %v147_v40 = vld [vmem:[#allocation5 + $0x2f0] sm:$0xff]  ;;  %v162_v42 = vld [vmem:[#allocation5 + $0x368] sm:$0xff]  ;;  %v156_v43 = vld [vmem:[#allocation5 + $0x338] sm:$0xff]  ;;  %v625_v45 = vpack.c.bf16 %v145_v37, %v137_v36 }
  0x5d   :  { %640 = vmatprep.subr.bf16.mxu1 %v639_v55  ;;  %429 = vmatprep.mubr.f32.mxu0 %v773_v0  ;;  %v164_v44 = vld [vmem:[#allocation5 + $0x378] sm:$0xff]  ;;  %v657_v46 = vpack.c.bf16 %v147_v40, %v139_v38  ;;  %v627_v47 = vpack.c.bf16 %v162_v42, %v154_v41  ;;  %v153_v49 = vld [vmem:[#allocation5 + $0x320] sm:$0xff]  ;;  %v155_v51 = vld [vmem:[#allocation5 + $0x330] sm:$0xff] }
  0x5e   :  { %500 = vmatprep.mubr.f32.mxu1 %v773_v0  ;;  %v649_v0 = vpack.c.bf16 %v115_v17, %v107_v15  ;;  %v161_v50 = vld [vmem:[#allocation5 + $0x360] sm:$0xff]  ;;  %v659_v52 = vpack.c.bf16 %v164_v44, %v156_v43  ;;  %v163_v53 = vld [vmem:[#allocation5 + $0x370] sm:$0xff]  ;;  %v170_v54 = vld [vmem:[#allocation5 + $0x3a8] sm:$0xff] }
  0x5f   :  { %610 = vmatpush1.bf16.msra.mxu0 %v609_v61  ;;  %v178_v55 = vld [vmem:[#allocation5 + $0x3e8] sm:$0xff]  ;;  %v172_v56 = vld [vmem:[#allocation5 + $0x3b8] sm:$0xff]  ;;  %v629_v58 = vpack.c.bf16 %v161_v50, %v153_v49  ;;  %v661_v59 = vpack.c.bf16 %v163_v53, %v155_v51  ;;  %v169_v61 = vld [vmem:[#allocation5 + $0x3a0] sm:$0xff] }
  0x60   :  { %642 = vmatpush1.bf16.msra.mxu1 %v641_v62  ;;  %612 = vmatprep.subr.bf16.mxu0 %v611_v63  ;;  %v180_v57 = vld [vmem:[#allocation5 + $0x3f8] sm:$0xff]  ;;  %v631_v60 = vpack.c.bf16 %v178_v55, %v170_v54  ;;  %v177_v62 = vld [vmem:[#allocation5 + $0x3e0] sm:$0xff]  ;;  %v171_v1 = vld [vmem:[#allocation5 + $0x3b0] sm:$0xff] }
  0x61   :  { %644 = vmatprep.subr.bf16.mxu1 %v643_v4  ;;  %v663_v63 = vpack.c.bf16 %v180_v57, %v172_v56  ;;  %v179_v2 = vld [vmem:[#allocation5 + $0x3f0] sm:$0xff]  ;;  %v633_v3 = vpack.c.bf16 %v177_v62, %v169_v61  ;;  %v181_v8 = vld [vmem:[#allocation7] sm:$0xff] }
  0x62   :  { %v665_v4 = vpack.c.bf16 %v179_v2, %v171_v1  ;;  %v194_v13 = vrot.slane %v181_v8, %v193_v9  ;;  %v202_v30 = vrot.slane %v181_v8, %v201_v26  ;;  %v206_v32 = vrot.slane %v181_v8, %v205_v28 }
  0x63   :  { %614 = vmatpush1.bf16.msra.mxu0 %v613_v10  ;;  %v189_v10 = vsub.s32 1, %v184_v6 }
  0x64   :  { %646 = vmatpush1.bf16.msra.mxu1 %v645_v11  ;;  %616 = vmatprep.subr.bf16.mxu0 %v615_v12  ;;  %v197_v11 = vsub.s32 3, %v184_v6  ;;  %v186_v12 = vrot.slane %v181_v8, %v185_v7 }
  0x65   :  { %648 = vmatprep.subr.bf16.mxu1 %v647_v16  ;;  %v190_v14 = vrot.slane %v181_v8, %v189_v10 }
  0x66   :  { %v198_v15 = vrot.slane %v181_v8, %v197_v11 }
  0x67   :  { %618 = vmatpush1.bf16.msra.mxu0 %v617_v22 }
  0x68   :  { %650 = vmatpush1.bf16.msra.mxu1 %v649_v0  ;;  %620 = vmatprep.subr.bf16.mxu0 %v619_v23 }
  0x69   :  { %652 = vmatprep.subr.bf16.mxu1 %v651_v27  ;;  %v209_v27 = vsub.s32 6, %v184_v6 }
  0x6b   :  { %622 = vmatpush1.bf16.msra.mxu0 %v621_v33  ;;  %v210_v31 = vrot.slane %v181_v8, %v209_v27  ;;  %v214_v33 = vrot.slane %v181_v8, %v213_v29 }
  0x6c   :  { %654 = vmatpush1.bf16.msra.mxu1 %v653_v34  ;;  %624 = vmatprep.subr.bf16.mxu0 %v623_v35 }
  0x6d   :  { %656 = vmatprep.subr.bf16.mxu1 %v655_v39 }
  0x6f   :  { %626 = vmatpush1.bf16.msra.mxu0 %v625_v45 }
  0x70   :  { %658 = vmatpush1.bf16.msra.mxu1 %v657_v46  ;;  %628 = vmatprep.subr.bf16.mxu0 %v627_v47 }
  0x71   :  { %660 = vmatprep.subr.bf16.mxu1 %v659_v52 }
  0x73   :  { %630 = vmatpush1.bf16.msra.mxu0 %v629_v58 }
  0x74   :  { %662 = vmatpush1.bf16.msra.mxu1 %v661_v59  ;;  %632 = vmatprep.subr.bf16.mxu0 %v631_v60 }
  0x75   :  { %664 = vmatprep.subr.bf16.mxu1 %v663_v63 }
  0x77   :  { %634 = vmatpush1.bf16.msra.mxu0 %v633_v3 }
  0x78   :  { %666 = vmatpush1.bf16.msra.mxu1 %v665_v4 }
  0x7a   :  { %430 = vmatmul.mubr.f32.vlgmr.msra.gmra.mrb[2].mxu0 %v833_v48 }
  0x7b   :  { %501 = vmatmul.mubr.f32.vlgmr.msra.gmra.mrb[2].mxu1 %v833_v48 }
 0x12d   :  { %v289_v16 = vpop.f32.mrb[0].mxu0 }
 0x12e   :  { %v290_v17 = vadd.f32 %v289_v16, %v186_v12  ;;  %v360_v18 = vpop.f32.mrb[0].mxu1  ;;  %v291_v19 = vpop.f32.mrb[1].mxu0 }
 0x12f   :  { %v361_v20 = vadd.f32 %v360_v18, %v194_v13  ;;  %v292_v21 = vadd.f32 %v291_v19, %v190_v14  ;;  %v362_v22 = vpop.f32.mrb[1].mxu1 }
 0x130   :  { %v507_v0 = vmax.f32 %v290_v17, 0.0  ;;  %v363_v48 = vadd.f32 %v362_v22, %v198_v15 }
 0x131   :  { %v509_v23 = vmax.f32 %v361_v20, 0.0  ;;  %v508_v24 = vmax.f32 %v292_v21, 0.0 }
 0x132   :  { %515 = vst [vmem:[#allocation8] sm:$0xff] %v507_v0  ;;  %v510_v25 = vmax.f32 %v363_v48, 0.0 }
 0x133   :  { %517 = vst [vmem:[#allocation8 + $0x10] sm:$0xff] %v509_v23  ;;  %516 = vst [vmem:[#allocation8 + $0x8] sm:$0xff] %v508_v24 }
 0x134   :  { %518 = vst [vmem:[#allocation8 + $0x18] sm:$0xff] %v510_v25 }
 0x14d   :  { %v431_v34 = vpop.f32.mrb[2].mxu0 }
 0x14e   :  { %v432_v35 = vadd.f32 %v431_v34, %v202_v30  ;;  %v502_v36 = vpop.f32.mrb[2].mxu1  ;;  %v433_v37 = vpop.f32.mrb[3].mxu0 }
 0x14f   :  { %v503_v38 = vadd.f32 %v502_v36, %v210_v31  ;;  %v434_v39 = vadd.f32 %v433_v37, %v206_v32  ;;  %v504_v40 = vpop.f32.mrb[3].mxu1 }
 0x150   :  { %v511_v41 = vmax.f32 %v432_v35, 0.0  ;;  %v505_v42 = vadd.f32 %v504_v40, %v214_v33 }
 0x151   :  { %v513_v43 = vmax.f32 %v503_v38, 0.0  ;;  %v512_v44 = vmax.f32 %v434_v39, 0.0 }
 0x152   :  { %519 = vst [vmem:[#allocation8 + $0x20] sm:$0xff] %v511_v41  ;;  %v514_v45 = vmax.f32 %v505_v42, 0.0 }
 0x153   :  { %521 = vst [vmem:[#allocation8 + $0x30] sm:$0xff] %v513_v43  ;;  %520 = vst [vmem:[#allocation8 + $0x28] sm:$0xff] %v512_v44 }
 0x154   :  { %522 = vst [vmem:[#allocation8 + $0x38] sm:$0xff] %v514_v45 }
 0x155   :  { %751 = shalt.err (!%p748_p0)
}
 0x156   :  { %s752_s25 = scalar_lea.hbm %s856_s3, 1024 }
 0x157   :  { %p753_p1 = scmp.ne.s32.totalorder %s856_s3, %s752_s25  ;;  %p756_p2 = scmp.lt.u32.totalorder %s752_s25, %s856_s3 }
 0x159   :  { %p758_p3 = pnand %p756_p2, %p753_p1 }
 0x15b   :  { %761 = shalt.err (!%p758_p3)
}
 0x15c   :  { %532 = dma.vmem_to_hbm [thread:$0]  %s530_s21, 1024, %s856_s3, [#allocation4]  }
 0x15d   :  { %766 = dma.done.wait [#allocation4], 1024  }
 0x15e   :  { %767 = vsyncadd [#allocation4], 4294966272 }
 0x15f   :  { %536 = vsyncpa [#allocation3], 1 }
 0x160   :  { %537 = vsyncpa [#allocation6], 1 }
 0x161   :  { %538 = vsyncpa [#allocation4], 1 }

</bundles_post_ra>
